<compile_context>
chip_gen: v7x
topology: tpu7x:2x2x1
jax: 0.10.0
libtpu: 0.0.40
codegen_flags: <defaults>
</compile_context>

<pallas_src>
import functools

import jax
import jax.numpy as jnp
from jax.experimental import pallas as pl
from jax.experimental.pallas import tpu as pltpu


def _classifier_kernel(x_ref, w_in_ref, b_in_ref,
                       w12_ref, b12_ref,
                       w_out_ref, b_out_ref,
                       o_ref, *, use_sigmoid: bool):
    x = x_ref[...].astype(jnp.float32)

    # in_layer + ReLU : [TB, F] @ [F, 20] + [1, 20]
    h = jnp.dot(x, w_in_ref[...], preferred_element_type=jnp.float32) + b_in_ref[...]
    h = jnp.maximum(h, 0.0)

    # hidd1 || hidd2 fused : relu(h @ [w1|w2] + [b1|b2])  -> [TB, 20]
    # (ReLU is elementwise, so this equals cat([relu(h@w1+b1), relu(h@w2+b2)], -1))
    x12 = jnp.dot(h, w12_ref[...], preferred_element_type=jnp.float32) + b12_ref[...]
    x12 = jnp.maximum(x12, 0.0)

    # out layer on the (implicitly concatenated) hidden vector.
    logits = (jnp.dot(x12, w_out_ref[...], preferred_element_type=jnp.float32)
              + b_out_ref[...])

    if use_sigmoid:
        # sigmoid(z) = 1 / (1 + exp(-z)); exp on EUP, reciprocal on EUP vrcp.
        out = pl.reciprocal(1.0 + jnp.exp(-logits), approx=True)
    else:
        m = jnp.max(logits, axis=-1, keepdims=True)
        e = jnp.exp(logits - m)
        out = e * pl.reciprocal(jnp.sum(e, axis=-1, keepdims=True), approx=True)

    o_ref[...] = out.astype(o_ref.dtype)


def _round_up(n, m):
    return ((n + m - 1) // m) * m


def torch_classifier_forward(x, params, tb=512):
    """x: [B, input_feature] float32.  params: dict of [in, out] weights and [1, out] biases."""
    B, F = x.shape
    out_f = params["w_out"].shape[1]
    use_sigmoid = (out_f == 1)

    # Trace-time fusion of the two parallel hidden layers (removes one matmul
    # and the w_out split entirely; split widths derived from param shapes).
    w12 = jnp.concatenate([params["w1"], params["w2"]], axis=-1)   # [20, 20]
    b12 = jnp.concatenate([params["b1"], params["b2"]], axis=-1)   # [1, 20]

    # Batch tile: multiple of 8 (f32 sublane), clamped so tiny B still works.
    tb_eff = min(tb, _round_up(B, 8))
    grid = (pl.cdiv(B, tb_eff),)

    def resident(shape):
        # Weights/biases: full-array block, constant index map -> VMEM-resident.
        return pl.BlockSpec(shape, lambda i: (0,) * len(shape))

    kernel = functools.partial(_classifier_kernel, use_sigmoid=use_sigmoid)

    return pl.pallas_call(
        kernel,
        out_shape=jax.ShapeDtypeStruct((B, out_f), jnp.float32),
        grid=grid,
        in_specs=[
            pl.BlockSpec((tb_eff, F), lambda i: (i, 0)),        # x: streamed
            resident(params["w_in"].shape),
            resident(params["b_in"].shape),
            resident(w12.shape),
            resident(b12.shape),
            resident(params["w_out"].shape),
            resident(params["b_out"].shape),
        ],
        out_specs=pl.BlockSpec((tb_eff, out_f), lambda i: (i, 0)),
        compiler_params=pltpu.CompilerParams(
            dimension_semantics=("parallel",)),
    )(x, params["w_in"], params["b_in"], w12, b12,
      params["w_out"], params["b_out"])


def init_params(key, input_feature, output_feature):
    """Deterministic synthetic init (uniform, PyTorch-Linear-like fan-in scaling)."""
    def linear(k, fan_in, fan_out):
        kw, kb = jax.random.split(k)
        bound = 1.0 / jnp.sqrt(jnp.float32(fan_in))
        w = jax.random.uniform(kw, (fan_in, fan_out), jnp.float32, -bound, bound)
        b = jax.random.uniform(kb, (1, fan_out), jnp.float32, -bound, bound)
        return w, b

    k_in, k1, k2, k_out = jax.random.split(key, 4)
    w_in, b_in = linear(k_in, input_feature, 20)
    w1, b1 = linear(k1, 20, 10)
    w2, b2 = linear(k2, 20, 10)
    w_out, b_out = linear(k_out, 20, output_feature)
    return {"w_in": w_in, "b_in": b_in,
            "w1": w1, "b1": b1,
            "w2": w2, "b2": b2,
            "w_out": w_out, "b_out": b_out}


def reference_forward(x, params):
    """Pure-JAX reference mirroring the torch forward, for a sanity check."""
    out_f = params["w_out"].shape[1]
    h = jnp.maximum(x @ params["w_in"] + params["b_in"], 0.0)
    x1 = jnp.maximum(h @ params["w1"] + params["b1"], 0.0)
    x2 = jnp.maximum(h @ params["w2"] + params["b2"], 0.0)
    logits = jnp.concatenate([x1, x2], axis=-1) @ params["w_out"] + params["b_out"]
    if out_f == 1:
        return jax.nn.sigmoid(logits)
    return jax.nn.softmax(logits, axis=-1)


if __name__ == "__main__":
    INPUT_FEATURE = 32
    BATCH = 8

    key = jax.random.PRNGKey(0)
    k_params, k_params2, k_x = jax.random.split(key, 3)
    x = jax.random.normal(k_x, (BATCH, INPUT_FEATURE), jnp.float32)

    # Softmax head (output_feature > 1).
    params = init_params(k_params, INPUT_FEATURE, 4)
    out = jax.block_until_ready(torch_classifier_forward(x, params))
    ref = reference_forward(x, params)
    assert out.shape == (BATCH, 4)
    # approx reciprocal (EUP vrcp) => slightly looser tolerance than exact f32.
    assert jnp.allclose(out, ref, atol=2e-3, rtol=2e-3)

    # Sigmoid head (output_feature == 1).
    params1 = init_params(k_params2, INPUT_FEATURE, 1)
    out1 = jax.block_until_ready(torch_classifier_forward(x, params1))
    ref1 = reference_forward(x, params1)
    assert out1.shape == (BATCH, 1)
    assert jnp.allclose(out1, ref1, atol=2e-3, rtol=2e-3)

    print("KERNEL_OK")
</pallas_src>

<mosaic_0001>
module attributes {stable_mosaic.version = 11 : i64} {
  func.func @_classifier_kernel(%arg0: i32, %arg1: memref<8x32xf32, #tpu.memory_space<vmem>>, %arg2: memref<32x20xf32, #tpu.memory_space<vmem>>, %arg3: memref<1x20xf32, #tpu.memory_space<vmem>>, %arg4: memref<20x20xf32, #tpu.memory_space<vmem>>, %arg5: memref<1x20xf32, #tpu.memory_space<vmem>>, %arg6: memref<20x4xf32, #tpu.memory_space<vmem>>, %arg7: memref<1x4xf32, #tpu.memory_space<vmem>>, %arg8: memref<8x4xf32, #tpu.memory_space<vmem>>) attributes {dimension_semantics = [#tpu.dimension_semantics<parallel>], iteration_bounds = array<i64: 1>, scalar_prefetch = 0 : i64, scratch_operands = 0 : i64, tpu.core_type = #tpu.core_type<tc>, window_params = [{transform_indices = @transform_0, window_bounds = array<i64: 8, 32>}, {pipeline_mode = #tpu.pipeline_mode<synchronous>, transform_indices = @transform_1, window_bounds = array<i64: 32, 20>}, {pipeline_mode = #tpu.pipeline_mode<synchronous>, transform_indices = @transform_2, window_bounds = array<i64: 1, 20>}, {pipeline_mode = #tpu.pipeline_mode<synchronous>, transform_indices = @transform_3, window_bounds = array<i64: 20, 20>}, {pipeline_mode = #tpu.pipeline_mode<synchronous>, transform_indices = @transform_4, window_bounds = array<i64: 1, 20>}, {pipeline_mode = #tpu.pipeline_mode<synchronous>, transform_indices = @transform_5, window_bounds = array<i64: 20, 4>}, {pipeline_mode = #tpu.pipeline_mode<synchronous>, transform_indices = @transform_6, window_bounds = array<i64: 1, 4>}, {transform_indices = @transform_7, window_bounds = array<i64: 8, 4>}]} {
    %c0 = arith.constant 0 : index
    %c0_0 = arith.constant 0 : index
    %0 = vector.load %arg1[%c0, %c0_0] : memref<8x32xf32, #tpu.memory_space<vmem>>, vector<8x32xf32>
    %c0_1 = arith.constant 0 : index
    %c0_2 = arith.constant 0 : index
    %1 = vector.load %arg2[%c0_1, %c0_2] : memref<32x20xf32, #tpu.memory_space<vmem>>, vector<32x20xf32>
    %cst = arith.constant dense<0.000000e+00> : vector<8x20xf32>
    %2 = tpu.matmul %0, %1, %cst {dimension_numbers = #tpu.dot_dimension_numbers<[1], [0], [0], [1], [0, 0, 1, 1], [], []>} : vector<8x32xf32>, vector<32x20xf32>, vector<8x20xf32> -> vector<8x20xf32>
    %c0_3 = arith.constant 0 : index
    %c0_4 = arith.constant 0 : index
    %3 = vector.load %arg3[%c0_3, %c0_4] : memref<1x20xf32, #tpu.memory_space<vmem>>, vector<1x20xf32>
    %4 = vector.broadcast %3 : vector<1x20xf32> to vector<8x20xf32>
    %5 = arith.addf %2, %4 : vector<8x20xf32>
    %cst_5 = arith.constant 0.000000e+00 : f32
    %6 = vector.broadcast %cst_5 : f32 to vector<8x20xf32>
    %7 = arith.maximumf %5, %6 : vector<8x20xf32>
    %c0_6 = arith.constant 0 : index
    %c0_7 = arith.constant 0 : index
    %8 = vector.load %arg4[%c0_6, %c0_7] : memref<20x20xf32, #tpu.memory_space<vmem>>, vector<20x20xf32>
    %cst_8 = arith.constant dense<0.000000e+00> : vector<8x20xf32>
    %9 = tpu.matmul %7, %8, %cst_8 {dimension_numbers = #tpu.dot_dimension_numbers<[1], [0], [0], [1], [0, 0, 1, 1], [], []>} : vector<8x20xf32>, vector<20x20xf32>, vector<8x20xf32> -> vector<8x20xf32>
    %c0_9 = arith.constant 0 : index
    %c0_10 = arith.constant 0 : index
    %10 = vector.load %arg5[%c0_9, %c0_10] : memref<1x20xf32, #tpu.memory_space<vmem>>, vector<1x20xf32>
    %11 = vector.broadcast %10 : vector<1x20xf32> to vector<8x20xf32>
    %12 = arith.addf %9, %11 : vector<8x20xf32>
    %cst_11 = arith.constant 0.000000e+00 : f32
    %13 = vector.broadcast %cst_11 : f32 to vector<8x20xf32>
    %14 = arith.maximumf %12, %13 : vector<8x20xf32>
    %c0_12 = arith.constant 0 : index
    %c0_13 = arith.constant 0 : index
    %15 = vector.load %arg6[%c0_12, %c0_13] : memref<20x4xf32, #tpu.memory_space<vmem>>, vector<20x4xf32>
    %cst_14 = arith.constant dense<0.000000e+00> : vector<8x4xf32>
    %16 = tpu.matmul %14, %15, %cst_14 {dimension_numbers = #tpu.dot_dimension_numbers<[1], [0], [0], [1], [0, 0, 1, 1], [], []>} : vector<8x20xf32>, vector<20x4xf32>, vector<8x4xf32> -> vector<8x4xf32>
    %c0_15 = arith.constant 0 : index
    %c0_16 = arith.constant 0 : index
    %17 = vector.load %arg7[%c0_15, %c0_16] : memref<1x4xf32, #tpu.memory_space<vmem>>, vector<1x4xf32>
    %18 = vector.broadcast %17 : vector<1x4xf32> to vector<8x4xf32>
    %19 = arith.addf %16, %18 : vector<8x4xf32>
    %cst_17 = arith.constant dense<0xFF800000> : vector<8xf32>
    %20 = vector.multi_reduction <maximumf>, %19, %cst_17 [1] : vector<8x4xf32> to vector<8xf32>
    %21 = vector.shape_cast %20 : vector<8xf32> to vector<8x1xf32>
    %22 = vector.broadcast %21 : vector<8x1xf32> to vector<8x4xf32>
    %23 = arith.subf %19, %22 : vector<8x4xf32>
    %24 = math.exp %23 : vector<8x4xf32>
    %cst_18 = arith.constant dense<0.000000e+00> : vector<8xf32>
    %25 = vector.multi_reduction <add>, %24, %cst_18 [1] : vector<8x4xf32> to vector<8xf32>
    %26 = vector.shape_cast %25 : vector<8xf32> to vector<8x1xf32>
    %27 = tpu.reciprocal %26 {approx = true} : vector<8x1xf32> -> vector<8x1xf32>
    %28 = vector.broadcast %27 : vector<8x1xf32> to vector<8x4xf32>
    %29 = arith.mulf %24, %28 : vector<8x4xf32>
    %c0_19 = arith.constant 0 : index
    %c0_20 = arith.constant 0 : index
    %30 = vector.load %arg8[%c0_19, %c0_20] : memref<8x4xf32, #tpu.memory_space<vmem>>, vector<8x4xf32>
    tpu.vector_store %arg8[%c0_19, %c0_20], %29 {strides = array<i32>} : memref<8x4xf32, #tpu.memory_space<vmem>>, vector<8x4xf32>,
    return
  }
  func.func @transform_0(%arg0: i32) -> (i32, i32) {
    %c0_i32 = arith.constant 0 : i32
    %c0_i32_0 = arith.constant 0 : i32
    return %arg0, %c0_i32 : i32, i32
  }
  func.func @transform_1(%arg0: i32) -> (i32, i32) {
    %c0_i32 = arith.constant 0 : i32
    %c0_i32_0 = arith.constant 0 : i32
    %c0_i32_1 = arith.constant 0 : i32
    return %c0_i32, %c0_i32_0 : i32, i32
  }
  func.func @transform_2(%arg0: i32) -> (i32, i32) {
    %c0_i32 = arith.constant 0 : i32
    %c0_i32_0 = arith.constant 0 : i32
    %c0_i32_1 = arith.constant 0 : i32
    return %c0_i32, %c0_i32_0 : i32, i32
  }
  func.func @transform_3(%arg0: i32) -> (i32, i32) {
    %c0_i32 = arith.constant 0 : i32
    %c0_i32_0 = arith.constant 0 : i32
    %c0_i32_1 = arith.constant 0 : i32
    return %c0_i32, %c0_i32_0 : i32, i32
  }
  func.func @transform_4(%arg0: i32) -> (i32, i32) {
    %c0_i32 = arith.constant 0 : i32
    %c0_i32_0 = arith.constant 0 : i32
    %c0_i32_1 = arith.constant 0 : i32
    return %c0_i32, %c0_i32_0 : i32, i32
  }
  func.func @transform_5(%arg0: i32) -> (i32, i32) {
    %c0_i32 = arith.constant 0 : i32
    %c0_i32_0 = arith.constant 0 : i32
    %c0_i32_1 = arith.constant 0 : i32
    return %c0_i32, %c0_i32_0 : i32, i32
  }
  func.func @transform_6(%arg0: i32) -> (i32, i32) {
    %c0_i32 = arith.constant 0 : i32
    %c0_i32_0 = arith.constant 0 : i32
    %c0_i32_1 = arith.constant 0 : i32
    return %c0_i32, %c0_i32_0 : i32, i32
  }
  func.func @transform_7(%arg0: i32) -> (i32, i32) {
    %c0_i32 = arith.constant 0 : i32
    %c0_i32_0 = arith.constant 0 : i32
    return %arg0, %c0_i32 : i32, i32
  }
}

</mosaic_0001>

<bundles_post_ra>
// kernel: tpu_custom_call.1
= control target key start
LH: loop header
LB: loop body
LE: loop exit
PB: predicated region body
PF: predicated region fallthrough
CT: control target
= control target key end

     0   :  { %v374_v0 = vmov 0.0|0.0   ;;  %vm375_vm0 = vmmov 0   ;;  %v376_v4 = vmov 0.0   ;;  %vm38_vm1 = vcmask 261120   ;;  %s470_s1 = inlined_call_operand.vmem [shape: f32[32,20], index: 1, kind: input, shape index: {}]   ;;  %s471_s0 = inlined_call_operand.vmem [shape: f32[8,32], index: 0, kind: input, shape index: {}]   ;;  %s472_s3 = inlined_call_operand.vmem [shape: f32[20,20], index: 3, kind: input, shape index: {}]   ;;  %s473_s2 = inlined_call_operand.vmem [shape: f32[1,20], index: 2, kind: input, shape index: {}]   ;;  %s474_s5 = inlined_call_operand.vmem [shape: f32[20,4], index: 5, kind: input, shape index: {}]   ;;  %s475_s4 = inlined_call_operand.vmem [shape: f32[1,20], index: 4, kind: input, shape index: {}]   ;;  %s476_s6 = inlined_call_operand.vmem [shape: f32[1,4], index: 6, kind: input, shape index: {}]   ;;  %s477_s7 = inlined_call_operand.vmem [shape: f32[8,4], index: 7, kind: output, shape index: {}]  }
   0x1   :  { %355 = vmatprep.subr.bf16.mxu0 %v374_v0  ;;  %v27_v1 = vld [vmem:[%s470_s1] sm:$0xff]  ;;  %v28_v2 = vld [vmem:[%s470_s1 + $0x8] sm:$0xff]  ;;  %v29_v3 = vld [vmem:[%s470_s1 + $0x10] sm:$0xff]  ;;  %334 = vmatprep.mubr.msk.f32.mxu0 %vm375_vm0, %v376_v4  ;;  %vm127_vm2 = vcmask 1043456   ;;  %vm123_vm3 = vcmask 162816   ;;  %vm288_vm4 = vcmask 31744  }
   0x2   :  { %v356_v5 = vpack.c.bf16 %v28_v2, %v27_v1  ;;  %v30_v6 = vld [vmem:[%s470_s1 + $0x18] sm:$0xff]  ;;  %361 = vmatprep.subr.bf16.mxu1 %v374_v0  ;;  %343 = vmatprep.mubr.msk.f32.mxu1 %vm375_vm0, %v376_v4  ;;  %v26_v8 = vld [vmem:[%s471_s0] sm:$0xff]  ;;  %v114_v10 = vld [vmem:[%s472_s3 + $0x8] sm:$0xff] }
   0x3   :  { %v359_v7 = vpack.c.bf16 %v30_v6, %v29_v3  ;;  %v113_v9 = vld [vmem:[%s472_s3] sm:$0xff]  ;;  %v115_v12 = vld [vmem:[%s472_s3 + $0x10] sm:$0xf]  ;;  %v203_v15 = vld [vmem:[%s474_s5 + $0x8] sm:$0xff] }
   0x4   :  { %357 = vmatpush3.bf16.msra.mxu0 %v356_v5  ;;  %v362_v11 = vpack.c.bf16 %v114_v10, %v113_v9  ;;  %v305_v13 = vld [vmem:[%s473_s2] ss:$0 sm:$0xff]  ;;  %v204_v21 = vld [vmem:[%s474_s5 + $0x10] sm:$0xf] }
   0x5   :  { %358 = vmatprep.subr.bf16.mxu0 %v374_v0  ;;  %v202_v14 = vld [vmem:[%s474_s5] sm:$0xff] }
   0x6   :  { %363 = vmatpush3.bf16.msra.mxu1 %v362_v11  ;;  %v365_v19 = vpack.c.bf16 %v203_v15, %v202_v14  ;;  %v307_v22 = vld [vmem:[%s475_s4] ss:$0 sm:$0xff] }
   0x7   :  { %341 = vmatprep.subr.mxu1 %v376_v4  ;;  %v310_v27 = vld [vmem:[%s476_s6] ss:$0 sm:$0xff] }
   0x8   :  { %360 = vmatpush3.bf16.msra.mxu0 %v359_v7 }
   0xa   :  { %342 = vmatpush3.msk.msra.mxu1 %vm127_vm2, %v115_v12 }
   0xb   :  { %335 = vmatmul.mubr.msk.f32.vlgmr.msra.gmra.mrb[0].mxu0 %vm38_vm1, %v26_v8  ;;  %364 = vmatprep.subr.bf16.mxu1 %v374_v0 }
  0xde   :  { %v108_v16 = vpop.f32.mrb[0].mxu0 }
  0xdf   :  { %v109_v17 = vadd.f32 %v305_v13, %v108_v16  ;;  %v336_v18 = vpop.f32.mrb[1].mxu0 }
  0xe1   :  { %v112_v20 = vmax.f32 %v109_v17, 0.0 }
  0xe3   :  { %344 = vmatmul.mubr.msk.f32.vlgmr.msra.gmra.mrb[0].mxu1 %vm123_vm3, %v112_v20 }
  0xe4   :  { %366 = vmatpush3.bf16.msra.mxu1 %v365_v19  ;;  %352 = vmatprep.mubr.msk.f32.mxu1 %vm375_vm0, %v376_v4 }
  0xe5   :  { %350 = vmatprep.subr.mxu1 %v376_v4 }
  0xe8   :  { %351 = vmatpush3.msk.msra.mxu1 %vm127_vm2, %v204_v21 }
 0x1b6   :  { %v197_v23 = vpop.f32.mrb[0].mxu1 }
 0x1b7   :  { %v198_v24 = vadd.f32 %v307_v22, %v197_v23  ;;  %v345_v25 = vpop.f32.mrb[1].mxu1 }
 0x1b9   :  { %v201_v26 = vmax.f32 %v198_v24, 0.0 }
 0x1bb   :  { %353 = vmatmul.mubr.msk.f32.vlgmr.msra.gmra.mrb[2].mxu1 %vm123_vm3, %v201_v26 }
 0x28e   :  { %v284_v28 = vpop.f32.mrb[2].mxu1 }
 0x28f   :  { %v285_v29 = vadd.f32 %v310_v27, %v284_v28  ;;  %v354_v30 = vpop.f32.mrb[3].mxu1 }
 0x291   :  { %v289_v31 = vsel %vm288_vm4, %v285_v29, -inf }
 0x292   :  { %290 = vmax.xlane.f32.xlu0 %v289_v31 }
 0x31f   :  { %v291_v32 = vpop.xlane.xlu0 %290 }
 0x320   :  { %v292_v33 = vsub.f32 %v285_v29, %v291_v32 }
 0x322   :  { %v293_v34 = vmul.f32 1.442695, %v292_v33 }
 0x324   :  { %370 = vpow2.f32 %v293_v34 }
 0x32e   :  { %v371_v35 = vpop.eup %370 }
 0x32f   :  { %v295_v36 = vsel %vm288_vm4, %v371_v35, 0.0 }
 0x330   :  { %296 = vadd.xlane.f32.xlu0 %v295_v36 }
 0x3bd   :  { %v297_v37 = vpop.xlane.xlu0 %296 }
 0x3be   :  { %372 = vrcp.f32 %v297_v37 }
 0x3c8   :  { %v373_v38 = vpop.eup %372 }
 0x3c9   :  { %v299_v39 = vmul.f32 %v373_v38, %v371_v35 }
 0x3cb   :  { %300 = vst.msk [vmem:[%s477_s7] sm:$0xff] %vm288_vm4, %v299_v39 }

</bundles_post_ra>
